<compile_context>
chip_gen: v7x
topology: tpu7x:2x2x1
jax: 0.10.0
libtpu: 0.0.40
codegen_flags: <defaults>
</compile_context>

<pallas_src>
import functools

import jax
import jax.numpy as jnp
from jax import lax
from jax.experimental import pallas as pl
from jax.experimental.pallas import tpu as pltpu


def _round_up(x, m):
    return (x + m - 1) // m * m


# ----------------------------- Pallas kernel --------------------------------
def _basic_conv2d_kernel(p_ref, w_ref, a_ref, g_ref, b_ref, o_ref, *, eps):
    """One batch sample: conv (matmul) + GroupNorm + ReLU, lane-dense over HWp.

    p_ref: (1, Kp, HWp)   im2col patches (bf16), HWp on lanes (zero-padded cols)
    w_ref: (Cout, Kp)     flattened conv weight (bf16, zero-padded K)
    a_ref: (Cout, Cout)   group-averaging matrix (f32):
                          A[i,j] = 1/(HW*Cg) if group(i)==group(j) else 0
    g_ref: (Cout, 1)      GroupNorm gamma (f32)
    b_ref: (Cout, 1)      GroupNorm beta  (f32)
    o_ref: (1, Cout, HWp) f32 output
    """
    # Convolution on the MXU: (Cout, Kp) @ (Kp, HWp) -> (Cout, HWp), f32 accumulate.
    conv = jnp.dot(w_ref[...], p_ref[0], preferred_element_type=jnp.float32)

    # Per-channel sum / sum-of-squares over HWp (cross-lane reduce; padded columns
    # are exactly zero so they do not perturb the statistics).
    s = jnp.sum(conv, axis=1, keepdims=True)             # (Cout, 1)
    sq = jnp.sum(conv * conv, axis=1, keepdims=True)     # (Cout, 1)

    # One tiny matmul maps per-channel stats to per-group means broadcast back
    # to every channel of the group: columns are [mean, E[x^2]].
    stats = jnp.concatenate([s, sq], axis=1)                              # (Cout, 2)
    grp = jnp.dot(a_ref[...], stats, preferred_element_type=jnp.float32)  # (Cout, 2)
    mean = grp[:, 0:1]
    var = jnp.maximum(grp[:, 1:2] - mean * mean, 0.0)     # clamp E[x^2]-mean^2 at 0
    inv = lax.rsqrt(var + eps)

    # Fold GroupNorm affine into one scale/shift per channel, then ReLU.
    scale = inv * g_ref[...]                 # (Cout, 1)
    shift = b_ref[...] - mean * scale        # (Cout, 1)
    o_ref[0] = jnp.maximum(conv * scale + shift, 0.0)


# ------------------------------ Wrapper --------------------------------------
def basic_conv2d(x, weight, gamma, beta, *, num_groups=8, stride=1, padding=1,
                 eps=1e-5, mxu_dtype=jnp.bfloat16):
    """x: (N, Cin, H, W); weight: (Cout, Cin, kh, kw); gamma/beta: (Cout,)."""
    N, Cin, H, W = x.shape
    Cout, _, kh, kw = weight.shape
    Ho = (H + 2 * padding - kh) // stride + 1
    Wo = (W + 2 * padding - kw) // stride + 1
    HW = Ho * Wo
    K = Cin * kh * kw
    Cg = Cout // num_groups

    # Lane / sublane padding: HWp multiple of 128 (unmasked vst + dense lanes),
    # Kp multiple of 16 (bf16 sublane pack). Zero padding is exact (see kernel).
    HWp = _round_up(HW, 128)
    Kp = _round_up(K, 16)

    # --- im2col (glue, plain JAX) -> (N, K, HW) directly, no extra transposes ---
    xp = jnp.pad(x, ((0, 0), (0, 0), (padding, padding), (padding, padding)))
    cols = []
    for ki in range(kh):
        for kj in range(kw):
            cols.append(xp[:, :, ki:ki + Ho * stride:stride, kj:kj + Wo * stride:stride])
    # (N, Cin, kh*kw, Ho, Wo) with (Cin, kh, kw) ordering matching the weight flatten.
    p = jnp.stack(cols, axis=2).reshape(N, K, HW)
    p = jnp.pad(p, ((0, 0), (0, Kp - K), (0, HWp - HW))).astype(mxu_dtype)   # (N, Kp, HWp)
    w_mat = jnp.pad(weight.reshape(Cout, K), ((0, 0), (0, Kp - K))).astype(mxu_dtype)

    # Group-averaging matrix (Cout, Cout): row i averages over channels in group(i).
    # Denominator uses the TRUE HW (padded columns are zero and contribute nothing).
    grp_id = jnp.arange(Cout) // Cg
    A = (grp_id[:, None] == grp_id[None, :]).astype(jnp.float32) / float(HW * Cg)

    g2 = gamma.reshape(Cout, 1).astype(jnp.float32)
    b2 = beta.reshape(Cout, 1).astype(jnp.float32)

    out_bytes = N * Cout * HWp * 4
    in_bytes = (p.size * p.dtype.itemsize + w_mat.size * w_mat.dtype.itemsize
                + A.size * 4 + g2.size * 4 + b2.size * 4)
    cost = pl.CostEstimate(
        flops=2 * N * Cout * Kp * HWp + 2 * N * Cout * Cout * 2 + 8 * N * Cout * HWp,
        transcendentals=N * Cout,
        bytes_accessed=in_bytes + out_bytes,
    )

    out = pl.pallas_call(
        functools.partial(_basic_conv2d_kernel, eps=eps),
        out_shape=jax.ShapeDtypeStruct((N, Cout, HWp), jnp.float32),
        grid=(N,),
        in_specs=[
            pl.BlockSpec((1, Kp, HWp), lambda n: (n, 0, 0)),
            pl.BlockSpec((Cout, Kp), lambda n: (0, 0)),
            pl.BlockSpec((Cout, Cout), lambda n: (0, 0)),
            pl.BlockSpec((Cout, 1), lambda n: (0, 0)),
            pl.BlockSpec((Cout, 1), lambda n: (0, 0)),
        ],
        out_specs=pl.BlockSpec((1, Cout, HWp), lambda n: (n, 0, 0)),
        compiler_params=pltpu.CompilerParams(dimension_semantics=("parallel",)),
        cost_estimate=cost,
    )(p, w_mat, A, g2, b2)

    # Drop lane padding; (N, Cout, HW) is channel-major so a pure reshape gives NCHW.
    return out[:, :, :HW].reshape(N, Cout, Ho, Wo)


# --------------------------- Pure-JAX reference -------------------------------
def _reference(x, weight, gamma, beta, *, num_groups=8, stride=1, padding=1, eps=1e-5):
    conv = lax.conv_general_dilated(
        x, weight, window_strides=(stride, stride),
        padding=((padding, padding), (padding, padding)),
        dimension_numbers=("NCHW", "OIHW", "NCHW"))
    N, C, H, W = conv.shape
    g = conv.reshape(N, num_groups, C // num_groups, H, W)
    mean = g.mean(axis=(2, 3, 4), keepdims=True)
    var = g.var(axis=(2, 3, 4), keepdims=True)  # biased, like PyTorch GroupNorm
    g = (g - mean) * lax.rsqrt(var + eps)
    y = g.reshape(N, C, H, W) * gamma.reshape(1, C, 1, 1) + beta.reshape(1, C, 1, 1)
    return jnp.maximum(y, 0.0)


if __name__ == "__main__":
    key = jax.random.PRNGKey(0)
    k_x, k_w, k_g, k_b = jax.random.split(key, 4)

    N, Cin, H, W = 2, 4, 16, 16
    Cout, kh, kw = 16, 3, 3  # Cout divisible by 8 groups

    x = jax.random.normal(k_x, (N, Cin, H, W), dtype=jnp.float32)
    weight = 0.1 * jax.random.normal(k_w, (Cout, Cin, kh, kw), dtype=jnp.float32)
    gamma = 1.0 + 0.1 * jax.random.normal(k_g, (Cout,), dtype=jnp.float32)
    beta = 0.1 * jax.random.normal(k_b, (Cout,), dtype=jnp.float32)

    run = jax.jit(functools.partial(basic_conv2d, num_groups=8, stride=1, padding=1))
    out = jax.block_until_ready(run(x, weight, gamma, beta))

    ref = _reference(x, weight, gamma, beta, num_groups=8, stride=1, padding=1)
    assert out.shape == (N, Cout, H, W), out.shape
    # bf16 MXU inputs (f32 accumulation / stats): tolerance widened accordingly.
    max_err = float(jnp.max(jnp.abs(out - ref)))
    assert jnp.allclose(out, ref, rtol=3e-2, atol=3e-2), max_err

    print("KERNEL_OK")
</pallas_src>

<mosaic_0001>
module attributes {stable_mosaic.version = 11 : i64} {
  func.func @_basic_conv2d_kernel(%arg0: i32, %arg1: memref<1x48x256xbf16, #tpu.memory_space<vmem>>, %arg2: memref<16x48xbf16, #tpu.memory_space<vmem>>, %arg3: memref<16x16xf32, #tpu.memory_space<vmem>>, %arg4: memref<16x1xf32, #tpu.memory_space<vmem>>, %arg5: memref<16x1xf32, #tpu.memory_space<vmem>>, %arg6: memref<1x16x256xf32, #tpu.memory_space<vmem>>) attributes {dimension_semantics = [#tpu.dimension_semantics<parallel>], iteration_bounds = array<i64: 2>, scalar_prefetch = 0 : i64, scratch_operands = 0 : i64, tpu.core_type = #tpu.core_type<tc>, window_params = [{transform_indices = @transform_0, window_bounds = array<i64: 1, 48, 256>}, {pipeline_mode = #tpu.pipeline_mode<synchronous>, transform_indices = @transform_1, window_bounds = array<i64: 16, 48>}, {pipeline_mode = #tpu.pipeline_mode<synchronous>, transform_indices = @transform_2, window_bounds = array<i64: 16, 16>}, {pipeline_mode = #tpu.pipeline_mode<synchronous>, transform_indices = @transform_3, window_bounds = array<i64: 16, 1>}, {pipeline_mode = #tpu.pipeline_mode<synchronous>, transform_indices = @transform_4, window_bounds = array<i64: 16, 1>}, {transform_indices = @transform_5, window_bounds = array<i64: 1, 16, 256>}]} {
    %c0 = arith.constant 0 : index
    %c0_0 = arith.constant 0 : index
    %0 = vector.load %arg2[%c0, %c0_0] : memref<16x48xbf16, #tpu.memory_space<vmem>>, vector<16x48xbf16>
    %c0_1 = arith.constant 0 : index
    %c0_2 = arith.constant 0 : index
    %c0_3 = arith.constant 0 : index
    %1 = vector.load %arg1[%c0_1, %c0_2, %c0_3] : memref<1x48x256xbf16, #tpu.memory_space<vmem>>, vector<1x48x256xbf16>
    %2 = vector.shape_cast %1 : vector<1x48x256xbf16> to vector<48x256xbf16>
    %cst = arith.constant dense<0.000000e+00> : vector<16x256xf32>
    %3 = tpu.matmul %0, %2, %cst {dimension_numbers = #tpu.dot_dimension_numbers<[1], [0], [0], [1], [0, 0, 1, 1], [], []>} : vector<16x48xbf16>, vector<48x256xbf16>, vector<16x256xf32> -> vector<16x256xf32>
    %cst_4 = arith.constant dense<0.000000e+00> : vector<16xf32>
    %4 = vector.multi_reduction <add>, %3, %cst_4 [1] : vector<16x256xf32> to vector<16xf32>
    %5 = vector.shape_cast %4 : vector<16xf32> to vector<16x1xf32>
    %6 = arith.mulf %3, %3 : vector<16x256xf32>
    %cst_5 = arith.constant dense<0.000000e+00> : vector<16xf32>
    %7 = vector.multi_reduction <add>, %6, %cst_5 [1] : vector<16x256xf32> to vector<16xf32>
    %8 = vector.shape_cast %7 : vector<16xf32> to vector<16x1xf32>
    %9 = tpu.concatenate %5, %8 in 1 : vector<16x1xf32>, vector<16x1xf32> -> vector<16x2xf32>
    %c0_6 = arith.constant 0 : index
    %c0_7 = arith.constant 0 : index
    %10 = vector.load %arg3[%c0_6, %c0_7] : memref<16x16xf32, #tpu.memory_space<vmem>>, vector<16x16xf32>
    %cst_8 = arith.constant dense<0.000000e+00> : vector<16x2xf32>
    %11 = tpu.matmul %10, %9, %cst_8 {dimension_numbers = #tpu.dot_dimension_numbers<[1], [0], [0], [1], [0, 0, 1, 1], [], []>} : vector<16x16xf32>, vector<16x2xf32>, vector<16x2xf32> -> vector<16x2xf32>
    %12 = vector.extract_strided_slice %11 {offsets = [0, 0], sizes = [16, 1], strides = [1, 1]} : vector<16x2xf32> to vector<16x1xf32>
    %13 = vector.extract_strided_slice %11 {offsets = [0, 1], sizes = [16, 1], strides = [1, 1]} : vector<16x2xf32> to vector<16x1xf32>
    %14 = arith.mulf %12, %12 : vector<16x1xf32>
    %15 = arith.subf %13, %14 : vector<16x1xf32>
    %cst_9 = arith.constant 0.000000e+00 : f32
    %16 = vector.broadcast %cst_9 : f32 to vector<16x1xf32>
    %17 = arith.maximumf %15, %16 : vector<16x1xf32>
    %cst_10 = arith.constant 9.99999974E-6 : f32
    %18 = vector.broadcast %cst_10 : f32 to vector<16x1xf32>
    %19 = arith.addf %17, %18 : vector<16x1xf32>
    %20 = math.rsqrt %19 : vector<16x1xf32>
    %c0_11 = arith.constant 0 : index
    %c0_12 = arith.constant 0 : index
    %21 = vector.load %arg4[%c0_11, %c0_12] : memref<16x1xf32, #tpu.memory_space<vmem>>, vector<16x1xf32>
    %22 = arith.mulf %20, %21 : vector<16x1xf32>
    %c0_13 = arith.constant 0 : index
    %c0_14 = arith.constant 0 : index
    %23 = vector.load %arg5[%c0_13, %c0_14] : memref<16x1xf32, #tpu.memory_space<vmem>>, vector<16x1xf32>
    %24 = arith.mulf %12, %22 : vector<16x1xf32>
    %25 = arith.subf %23, %24 : vector<16x1xf32>
    %26 = vector.broadcast %22 : vector<16x1xf32> to vector<16x256xf32>
    %27 = arith.mulf %3, %26 : vector<16x256xf32>
    %28 = vector.broadcast %25 : vector<16x1xf32> to vector<16x256xf32>
    %29 = arith.addf %27, %28 : vector<16x256xf32>
    %cst_15 = arith.constant 0.000000e+00 : f32
    %30 = vector.broadcast %cst_15 : f32 to vector<16x256xf32>
    %31 = arith.maximumf %29, %30 : vector<16x256xf32>
    %c0_16 = arith.constant 0 : index
    %c0_17 = arith.constant 0 : index
    %c0_18 = arith.constant 0 : index
    %32 = vector.load %arg6[%c0_16, %c0_17, %c0_18] : memref<1x16x256xf32, #tpu.memory_space<vmem>>, vector<1x16x256xf32>
    %33 = vector.shape_cast %32 : vector<1x16x256xf32> to vector<16x256xf32>
    %34 = vector.shape_cast %31 : vector<16x256xf32> to vector<1x16x256xf32>
    tpu.vector_store %arg6[%c0_16, %c0_17, %c0_18], %34 {strides = array<i32>} : memref<1x16x256xf32, #tpu.memory_space<vmem>>, vector<1x16x256xf32>,
    return
  }
  func.func @transform_0(%arg0: i32) -> (i32, i32, i32) {
    %c0_i32 = arith.constant 0 : i32
    %c0_i32_0 = arith.constant 0 : i32
    %c0_i32_1 = arith.constant 0 : i32
    return %arg0, %c0_i32, %c0_i32_0 : i32, i32, i32
  }
  func.func @transform_1(%arg0: i32) -> (i32, i32) {
    %c0_i32 = arith.constant 0 : i32
    %c0_i32_0 = arith.constant 0 : i32
    %c0_i32_1 = arith.constant 0 : i32
    return %c0_i32, %c0_i32_0 : i32, i32
  }
  func.func @transform_2(%arg0: i32) -> (i32, i32) {
    %c0_i32 = arith.constant 0 : i32
    %c0_i32_0 = arith.constant 0 : i32
    %c0_i32_1 = arith.constant 0 : i32
    return %c0_i32, %c0_i32_0 : i32, i32
  }
  func.func @transform_3(%arg0: i32) -> (i32, i32) {
    %c0_i32 = arith.constant 0 : i32
    %c0_i32_0 = arith.constant 0 : i32
    %c0_i32_1 = arith.constant 0 : i32
    return %c0_i32, %c0_i32_0 : i32, i32
  }
  func.func @transform_4(%arg0: i32) -> (i32, i32) {
    %c0_i32 = arith.constant 0 : i32
    %c0_i32_0 = arith.constant 0 : i32
    %c0_i32_1 = arith.constant 0 : i32
    return %c0_i32, %c0_i32_0 : i32, i32
  }
  func.func @transform_5(%arg0: i32) -> (i32, i32, i32) {
    %c0_i32 = arith.constant 0 : i32
    %c0_i32_0 = arith.constant 0 : i32
    %c0_i32_1 = arith.constant 0 : i32
    return %arg0, %c0_i32, %c0_i32_0 : i32, i32, i32
  }
}

</mosaic_0001>

<bundles_post_ra>
// kernel: basic_conv2d.1
= control target key start
LH: loop header
LB: loop body
LE: loop exit
PB: predicated region body
PF: predicated region fallthrough
CT: control target
= control target key end

     0   :  { %s661_s18 = smov 0   ;;  %s730_s0 = inlined_call_operand.vmem [shape: bf16[2,48,256], index: 0, kind: input, shape index: {}]   ;;  %s731_s1 = inlined_call_operand.vmem [shape: bf16[16,48], index: 1, kind: input, shape index: {}]   ;;  %s732_s2 = inlined_call_operand.vmem [shape: f32[16,16], index: 2, kind: input, shape index: {}]   ;;  %s733_s3 = inlined_call_operand.vmem [shape: f32[16,1], index: 3, kind: input, shape index: {}]   ;;  %s734_s4 = inlined_call_operand.vmem [shape: f32[16,1], index: 4, kind: input, shape index: {}]   ;;  %s735_s5 = inlined_call_operand.vmem [shape: f32[2,16,256], index: 5, kind: output, shape index: {}]  }
   0x1 LB: > { %s552_s19 = sadd.s32 4294967295, %s625_s18   ;;  %p556_p0 = scmp.ge.s32.totalorder %s625_s18, 1  ;;  %s625_s18 = sphi %s661_s18, %s15_s18  }
   0x2   : > { %p187_p1 = scmp.lt.s32.totalorder %s625_s18, 3 }
   0x4   : > { %p188_p2 = pnand %p556_p0, %p187_p1 }
   0x5   : > { %p215_p3 = scmp.lt.s32.totalorder (!%p188_p2), %s552_s19, 1  ;;  %v627_v0 = vmov (!%p188_p2), 0   ;;  %v614_v7 = vld [vmem:[%s731_s1] sm:$0xff] (!%p188_p2)   ;;  %vm269_vm0 = vcmask (!%p188_p2), 392192   ;;  %vm337_vm1 = vcmask (!%p188_p2), 130048   ;;  %vm332_vm2 = vcmask (!%p188_p2), 7168  }
   0x6   : > { %191 = sbr.rel (%p188_p2) target bundleno = 1001 (0x3e9), region = 40  ;;  %305 = vmatprep.mubr.bf16.mxu0 (!%p188_p2), %v627_v0  ;;  %v335_v20 = vld [vmem:[%s732_s2] sm:$0xff] (!%p188_p2)  ;;  %v336_v28 = vld [vmem:[%s732_s2 + $0x8] sm:$0xff] (!%p188_p2)  ;;  %s628_s30 = smov (!%p188_p2), 1   ;;  %v629_v35 = vmov (!%p188_p2), 1  }
   0x7   : > { %581 = vmatprep.mubr.msk.f32.mxu1 (!%p188_p2), %vm337_vm1, %v335_v20  ;;  %v437_v33 = vld [vmem:[%s733_s3] sm:$0xff] (!%p188_p2)  ;;  %v438_v34 = vld [vmem:[%s733_s3 + $0x8] sm:$0xff] (!%p188_p2)  ;;  %602 = vset.pattern.permute.xlu0 (!%p188_p2), %v629_v35  ;;  %s630_s10 = smov (!%p188_p2), 127  }
   0x8   : > { %601 = vset.pattern.permute.xlu1 (!%p188_p2), %v629_v35  ;;  %v450_v50 = vld [vmem:[%s734_s4 + $0x8] sm:$0xff] (!%p188_p2)  ;;  %v449_v53 = vld [vmem:[%s734_s4] sm:$0xff] (!%p188_p2) }
   0xd   : > { %s737_s19 = smov (!%p215_p3, %s552_s19), 1 }
   0xe   : > { %s588_s20 = smul.u32 48, %s737_s19  ;;  %s572_s15 = sshll.u32 %s737_s19, 5 }
  0x10   : > { %s219_s23 = scalar_lea.vmem %s730_s0, %s588_s20  ;;  %s224_s20 = scalar_lea.vmem %s735_s5, %s572_s15 }
  0x11   : > { %v605_v1 = vld [vmem:[%s219_s23 + $0x4] ss:$8 sps:$4 sm:$0xff]   ;;  %v607_v2 = vld [vmem:[%s219_s23] ss:$8 sps:$4 sm:$0xff]   ;;  %v608_v3 = vld [vmem:[%s219_s23 + $0x14] ss:$8 sps:$4 sm:$0xff]  }
  0x12   : > { %273 = vmatprep.subr.bf16.mxu0 %v605_v1  ;;  %v610_v4 = vld [vmem:[%s219_s23 + $0x10] ss:$8 sps:$4 sm:$0xff]   ;;  %v611_v5 = vld [vmem:[%s219_s23 + $0x24] ss:$8 sps:$4 sm:$0xff]   ;;  %v613_v6 = vld [vmem:[%s219_s23 + $0x20] ss:$8 sps:$4 sm:$0xff]  }
  0x13   : > { %274 = vmatpush1.bf16.msra.mxu0 %v607_v2 }
  0x14   : > { %275 = vmatprep.subr.bf16.mxu0 %v608_v3 }
  0x17   : > { %276 = vmatpush1.bf16.msra.mxu0 %v610_v4 }
  0x18   : > { %277 = vmatprep.subr.bf16.mxu0 %v611_v5 }
  0x1b   : > { %278 = vmatpush1.bf16.msra.mxu0 %v613_v6 }
  0x1e   : > { %567 = vmatmul.mubr.msk.bf16.vlgmr.msra.gmra.mrb[0].mxu0 %vm269_vm0, %v614_v7 }
  0xf1   : > { %v679_v8 = vpop.f32.mrb[0].mxu0 }
  0xf2   : > { %v681_v9 = vpop.f32.mrb[1].mxu0  ;;  %v322_v10 = vmul.f32 %v679_v8, %v679_v8 }
  0xf3   : > { %v685_v11 = vpop.f32.mrb[2].mxu0  ;;  %v316_v12 = vadd.f32 %v681_v9, %v679_v8  ;;  %v323_v13 = vmul.f32 %v681_v9, %v681_v9 }
  0xf4   : > { %v691_v14 = vpop.f32.mrb[3].mxu0  ;;  %v324_v15 = vmul.f32 %v685_v11, %v685_v11 }
  0xf5   : > { %v325_v16 = vmul.f32 %v691_v14, %v691_v14  ;;  %317 = vadd.xlane.f32.xlu0 %v316_v12  ;;  %v326_v17 = vadd.f32 %v323_v13, %v322_v10  ;;  %v319_v18 = vadd.f32 %v691_v14, %v685_v11 }
  0xf7   : > { %327 = vadd.xlane.f32.xlu1 %v326_v17  ;;  %v329_v19 = vadd.f32 %v325_v16, %v324_v15 }
  0xf9   : > { %320 = vadd.xlane.f32.xlu0 %v319_v18 }
  0xfb   : > { %330 = vadd.xlane.f32.xlu1 %v329_v19 }
 0x182   : > { %v318_v21 = vpop.xlane.xlu0 %317 }
 0x184   : > { %v328_v22 = vpop.xlane.xlu1 %327 }
 0x185   : > { %v333_v25 = vsel %vm332_vm2, %v318_v21, %v328_v22 }
 0x186   : > { %v321_v23 = vpop.xlane.xlu0 %320 }
 0x188   : > { %v331_v24 = vpop.xlane.xlu1 %330 }
 0x189   : > { %v334_v26 = vsel %vm332_vm2, %v321_v23, %v331_v24 }
 0x18a   : > { %v584_v27 = vpack.c.bf16 %v334_v26, %v333_v25 }
 0x18c   : > { %585 = vmatprep.subr.bf16.mxu1 %v584_v27 }
 0x18d   : > { %587 = vmatpush3.bf16.msra.mxu1 %v584_v27 }
 0x190   : > { %582 = vmatmul.mubr.msk.f32.vlgmr.msra.gmra.mrb[0].mxu1 %vm337_vm1, %v336_v28 }
 0x263   : > { %v583_v29 = vpop.f32.mrb[0].mxu1 }
 0x264   : > { %v420_v30 = vmul.f32 %v583_v29, %v583_v29  ;;  %v410_v31 = vpop.f32.mrb[1].mxu1 }
 0x265   : > { %v419_v32 = vmul.f32 %v410_v31, %v410_v31 }
 0x266   : > { %425 = vrot.lane.b32.xlu1 %v420_v30, %s628_s30 }
 0x267   : > { %423 = vrot.lane.b32.xlu0 %v419_v32, %s628_s30 }
 0x26a   : > { %441 = vrot.lane.b32.xlu1 %v437_v33, %s628_s30 }
 0x26e   : > { %443 = vrot.lane.b32.xlu1 %v438_v34, %s628_s30 }
 0x2d8   : > { %v426_v36 = vpop.permute.xlu1 %425 }
 0x2d9   : > { %v430_v37 = vsub.f32 %v583_v29, %v426_v36  ;;  %v424_v38 = vpop.permute.xlu0 %423 }
 0x2da   : > { %v429_v39 = vsub.f32 %v410_v31, %v424_v38 }
 0x2db   : > { %v432_v40 = vmax.f32 %v430_v37, 0.0 }
 0x2dc   : > { %v431_v41 = vmax.f32 %v429_v39, 0.0  ;;  %v442_v44 = vpop.permute.xlu1 %441 }
 0x2dd   : > { %v434_v42 = vadd.f32 1e-05, %v432_v40 }
 0x2de   : > { %v433_v43 = vadd.f32 1e-05, %v431_v41 }
 0x2df   : > { %615 = vrsqrt.f32 %v434_v42 }
 0x2e0   : > { %617 = vrsqrt.f32 %v433_v43  ;;  %v444_v45 = vpop.permute.xlu1 %443 }
 0x2e9   : > { %v616_v46 = vpop.eup %615 }
 0x2ea   : > { %v618_v47 = vpop.eup %617  ;;  %v448_v48 = vmul.f32 %v616_v46, %v444_v45 }
 0x2eb   : > { %v447_v49 = vmul.f32 %v618_v47, %v442_v44 }
 0x2ec   : > { %455 = vrot.lane.b32.xlu1 %v448_v48, %s630_s10 }
 0x2ed   : > { %453 = vrot.lane.b32.xlu0 %v447_v49, %s630_s10 }
 0x2f0   : > { %468 = vperm.xlu1 %601, %v448_v48  }
 0x2f1   : > { %464 = vperm.xlu0 %602, %v447_v49  }
 0x2f4   : > { %603 = vset.pattern.permute.xlu1 %v627_v0 }
 0x2f5   : > { %604 = vset.pattern.permute.xlu0 %v627_v0 }
 0x35e   : > { %v456_v51 = vpop.permute.xlu1 %455 }
 0x35f   : > { %v460_v52 = vmul.f32 %v583_v29, %v456_v51  ;;  %v454_v54 = vpop.permute.xlu0 %453 }
 0x360   : > { %v459_v55 = vmul.f32 %v454_v54, %v410_v31 }
 0x361   : > { %v462_v56 = vsub.f32 %v450_v50, %v460_v52 }
 0x362   : > { %v461_v57 = vsub.f32 %v449_v53, %v459_v55 }
 0x363   : > { %482 = vperm.xlu0 %604, %v462_v56  }
 0x364   : > { %477 = vperm.xlu1 %603, %v461_v57  }
 0x36f   : > { %v469_v58 = vpop.permute.xlu1 %468 }
 0x370   : > { %v465_v59 = vpop.permute.xlu0 %464  ;;  %v473_v60 = vmul.f32 %v469_v58, %v685_v11  ;;  %v474_v61 = vmul.f32 %v469_v58, %v691_v14 }
 0x371   : > { %v471_v62 = vmul.f32 %v465_v59, %v679_v8  ;;  %v472_v63 = vmul.f32 %v465_v59, %v681_v9 }
 0x3e2   : > { %v483_v0 = vpop.permute.xlu0 %482 }
 0x3e3   : > { %v487_v1 = vadd.f32 %v483_v0, %v473_v60  ;;  %v488_v2 = vadd.f32 %v483_v0, %v474_v61  ;;  %v478_v3 = vpop.permute.xlu1 %477 }
 0x3e4   : > { %v485_v4 = vadd.f32 %v478_v3, %v471_v62  ;;  %v486_v5 = vadd.f32 %v478_v3, %v472_v63 }
 0x3e5   : > { %v491_v6 = vmax.f32 %v487_v1, 0.0  ;;  %v492_v7 = vmax.f32 %v488_v2, 0.0 }
 0x3e6   : > { %v489_v10 = vmax.f32 %v485_v4, 0.0  ;;  %v490_v11 = vmax.f32 %v486_v5, 0.0 }
 0x3e7   : > { %495 = vst [vmem:[%s224_s20 + $0x10] sm:$0xff] %v491_v6  ;;  %496 = vst [vmem:[%s224_s20 + $0x18] sm:$0xff] %v492_v7 }
 0x3e8   : > { %493 = vst [vmem:[%s224_s20] sm:$0xff] %v489_v10  ;;  %494 = vst [vmem:[%s224_s20 + $0x8] sm:$0xff] %v490_v11 }
 0x3e9 PF: > { %s15_s18 = sadd.s32 1, %s625_s18  }
 0x3ea   : > { %p12_p4 = scmp.ge.s32.totalorder %s15_s18, 4  }
 0x3ec   :  { %14 = sbr.rel (!%p12_p4) target bundleno = 1 (0x1), region = 70 }

</bundles_post_ra>
